<compile_context>
chip_gen: v5e
topology: v5e:2x2
jax: 0.10.0
libtpu: 0.0.40
codegen_flags: <defaults>
</compile_context>

<pallas_src>
import functools

import jax
import jax.numpy as jnp
from jax import lax
from jax.experimental import pallas as pl
from jax.experimental.pallas import tpu as pltpu


def _ce_label_smooth_kernel(x_ref, t_ref, out_ref, *, n, num_classes, epsilon,
                            tile_n):
    """One grid step: partial sum of per-row smoothed-CE losses for tile_n rows."""
    i = pl.program_id(0)

    x = x_ref[...].astype(jnp.float32)       # (tile_n, K); f32 math regardless of HBM dtype
    t = t_ref[...]                           # (tile_n, 1) int32 labels

    # Row-validity mask for the ragged tail tile.  Rows >= n in the last block
    # contain stale VMEM contents; the jnp.where below is LOAD-BEARING -- TPU
    # vsel does not propagate NaN/Inf from the unselected branch, so zeroing
    # invalid rows here is sufficient and safe.
    row_ids = i * tile_n + lax.broadcasted_iota(jnp.int32, (tile_n, 1), 0)
    valid = row_ids < n

    # Numerically stable per-row log-sum-exp.
    m = jnp.max(x, axis=1, keepdims=True)                               # (tile_n, 1)
    lse = m + jnp.log(jnp.sum(jnp.exp(x - m), axis=1, keepdims=True))   # (tile_n, 1)

    # Fused target-side reduction: sum_k w_k * x_k with
    # w_k = eps/K + (1-eps) * [k == y]  (one-hot compare, no gather/DMA).
    class_ids = lax.broadcasted_iota(jnp.int32, x.shape, 1)             # (tile_n, K)
    w = (jnp.float32(epsilon / num_classes)
         + jnp.float32(1.0 - epsilon) * (class_ids == t).astype(jnp.float32))
    wx = jnp.sum(w * x, axis=1, keepdims=True)                          # (tile_n, 1)

    loss_row = jnp.where(valid, lse - wx, jnp.float32(0.0))             # (tile_n, 1)
    partial = jnp.sum(loss_row)

    # Scalar partial at element (0,0) of an (8,128)-aligned f32 tile, zeros
    # elsewhere: unmasked full-tile store + dense epilogue sum.
    sub = lax.broadcasted_iota(jnp.int32, (1, 8, 128), 1)
    lane = lax.broadcasted_iota(jnp.int32, (1, 8, 128), 2)
    out_ref[...] = jnp.where((sub == 0) & (lane == 0), partial, jnp.float32(0.0))


def cross_entropy_label_smooth(inputs: jax.Array,
                               targets: jax.Array,
                               *,
                               epsilon: float = 0.1,
                               tile_n: int | None = None) -> jax.Array:
    """inputs: (N, K) logits (f32 or bf16); targets: (N,) int class ids. Scalar f32 loss."""
    n, k = inputs.shape
    lane_k = ((k + 127) // 128) * 128
    itemsize = jnp.dtype(inputs.dtype).itemsize
    # Padded VMEM bytes per row: lane-padded logits + lane-padded (tile_n,1)
    # int32 labels (128 words/row).
    bytes_per_row = lane_k * itemsize + 128 * 4
    n_pad8 = ((n + 7) // 8) * 8

    if tile_n is None:
        # HBM-streaming bound: target ~4 MiB blocks, cap at 8192 rows.
        block_budget = 4 * 1024 * 1024
        tile_n = max(8, min(8192, block_budget // bytes_per_row))
        tile_n = (tile_n // 8) * 8                 # sublane (8) alignment
        tile_n = min(tile_n, n_pad8)               # no bigger than padded batch
        # Megacore / pipeline depth: prefer >= 8 grid steps (shards across both
        # v7x TensorCores and gives the pipeline room), but never shrink a
        # block below ~1 MiB of padded bytes to get there.
        min_tiles = 8
        min_block_rows = max(8, (((1 << 20) // bytes_per_row) // 8) * 8)
        split_rows = max(8, (n_pad8 // min_tiles // 8) * 8)
        tile_n = min(tile_n, max(split_rows, min_block_rows))
    else:
        tile_n = max(8, (int(tile_n) // 8) * 8)
        tile_n = min(tile_n, n_pad8)

    num_tiles = pl.cdiv(n, tile_n)
    targets_2d = targets.astype(jnp.int32).reshape(n, 1)

    # VMEM limit from padded, double-buffered block sizes (+2x headroom for
    # compiler scratch), capped well under v7x's 64 MiB per-TC VMEM.
    block_bytes = tile_n * bytes_per_row
    vmem_need = 2 * block_bytes + 2 * (8 * 128 * 4)
    vmem_limit = int(min(max(2 * vmem_need, 8 * 1024 * 1024), 48 * 1024 * 1024))

    kernel = functools.partial(
        _ce_label_smooth_kernel,
        n=n, num_classes=k, epsilon=float(epsilon), tile_n=tile_n)

    partials = pl.pallas_call(
        kernel,
        out_shape=jax.ShapeDtypeStruct((num_tiles, 8, 128), jnp.float32),
        grid_spec=pltpu.PrefetchScalarGridSpec(
            num_scalar_prefetch=0,
            grid=(num_tiles,),
            in_specs=[
                pl.BlockSpec((tile_n, k), lambda i: (i, 0)),      # logits tile (HBM dtype)
                pl.BlockSpec((tile_n, 1), lambda i: (i, 0)),      # labels tile
            ],
            out_specs=pl.BlockSpec((1, 8, 128), lambda i: (i, 0, 0)),
        ),
        compiler_params=pltpu.CompilerParams(
            # Independent per-program partials -> batch axis can shard across
            # both TensorCores on v7x.
            dimension_semantics=("parallel",),
            vmem_limit_bytes=vmem_limit,
        ),
    )(inputs, targets_2d)

    # Dense final reduction (partials are zero except element (0,0) per tile),
    # then mean over the batch.  f32 accumulation is plenty for a loss scalar.
    return jnp.sum(partials) / jnp.float32(n)


def _reference_loss(x, y, eps):
    """Pure-JAX reference matching the PyTorch module (f32 math)."""
    x = x.astype(jnp.float32)
    k = x.shape[1]
    log_probs = jax.nn.log_softmax(x, axis=1)
    t = (1.0 - eps) * jax.nn.one_hot(y, k, dtype=jnp.float32) + eps / k
    return jnp.sum(jnp.mean(-t * log_probs, axis=0))


if __name__ == "__main__":
    key = jax.random.PRNGKey(0)
    k1, k2, k3, k4, k5, k6 = jax.random.split(key, 6)
    eps = 0.1

    # Case 1: small, sublane-aligned batch (f32).
    b1, c1 = 8, 16
    x1 = jax.random.normal(k1, (b1, c1), dtype=jnp.float32)
    y1 = jax.random.randint(k2, (b1,), 0, c1, dtype=jnp.int32)
    out1 = jax.block_until_ready(cross_entropy_label_smooth(x1, y1, epsilon=eps))
    ref1 = _reference_loss(x1, y1, eps)
    assert jnp.allclose(out1, ref1, rtol=1e-5, atol=1e-5), (out1, ref1)

    # Case 2: ragged batch (exercises the tail-row mask path, f32).
    b2, c2 = 10, 24
    x2 = jax.random.normal(k3, (b2, c2), dtype=jnp.float32)
    y2 = jax.random.randint(k4, (b2,), 0, c2, dtype=jnp.int32)
    out2 = jax.block_until_ready(cross_entropy_label_smooth(x2, y2, epsilon=eps))
    ref2 = _reference_loss(x2, y2, eps)
    assert jnp.allclose(out2, ref2, rtol=1e-5, atol=1e-5), (out2, ref2)

    # Case 3: bf16 streaming, K > 128, multi-tile grid with a ragged tail
    # (explicit small tile_n so the multi-tile path runs at a small shape).
    b3, c3 = 37, 130
    x3 = jax.random.normal(k5, (b3, c3), dtype=jnp.float32).astype(jnp.bfloat16)
    y3 = jax.random.randint(k6, (b3,), 0, c3, dtype=jnp.int32)
    out3 = jax.block_until_ready(
        cross_entropy_label_smooth(x3, y3, epsilon=eps, tile_n=16))
    ref3 = _reference_loss(x3, y3, eps)   # reference on the same bf16-rounded values
    assert jnp.allclose(out3, ref3, rtol=1e-4, atol=1e-4), (out3, ref3)

    print("KERNEL_OK")
</pallas_src>

<mosaic_0001>
module attributes {stable_mosaic.version = 11 : i64} {
  func.func @_ce_label_smooth_kernel(%arg0: i32, %arg1: memref<8x16xf32, #tpu.memory_space<vmem>>, %arg2: memref<8x1xi32, #tpu.memory_space<vmem>>, %arg3: memref<1x8x128xf32, #tpu.memory_space<vmem>>) attributes {dimension_semantics = [#tpu.dimension_semantics<parallel>], iteration_bounds = array<i64: 1>, scalar_prefetch = 0 : i64, scratch_operands = 0 : i64, tpu.core_type = #tpu.core_type<tc>, window_params = [{transform_indices = @transform_0, window_bounds = array<i64: 8, 16>}, {transform_indices = @transform_1, window_bounds = array<i64: 8, 1>}, {transform_indices = @transform_2, window_bounds = array<i64: 1, 8, 128>}]} {
    %c0 = arith.constant 0 : index
    %c0_0 = arith.constant 0 : index
    %0 = vector.load %arg1[%c0, %c0_0] : memref<8x16xf32, #tpu.memory_space<vmem>>, vector<8x16xf32>
    %c0_1 = arith.constant 0 : index
    %c0_2 = arith.constant 0 : index
    %1 = vector.load %arg2[%c0_1, %c0_2] : memref<8x1xi32, #tpu.memory_space<vmem>>, vector<8x1xi32>
    %c8_i32 = arith.constant 8 : i32
    %2 = arith.muli %arg0, %c8_i32 : i32
    %3 = tpu.iota {dimensions = array<i32: 0>} : vector<8x1xi32>
    %4 = vector.broadcast %2 : i32 to vector<8x1xi32>
    %5 = arith.addi %4, %3 : vector<8x1xi32>
    %c8_i32_3 = arith.constant 8 : i32
    %6 = vector.broadcast %c8_i32_3 : i32 to vector<8x1xi32>
    %7 = arith.cmpi slt, %5, %6 : vector<8x1xi32>
    %cst = arith.constant dense<0xFF800000> : vector<8xf32>
    %8 = vector.multi_reduction <maximumf>, %0, %cst [1] : vector<8x16xf32> to vector<8xf32>
    %9 = vector.shape_cast %8 : vector<8xf32> to vector<8x1xf32>
    %10 = vector.broadcast %9 : vector<8x1xf32> to vector<8x16xf32>
    %11 = arith.subf %0, %10 : vector<8x16xf32>
    %12 = math.exp %11 : vector<8x16xf32>
    %cst_4 = arith.constant dense<0.000000e+00> : vector<8xf32>
    %13 = vector.multi_reduction <add>, %12, %cst_4 [1] : vector<8x16xf32> to vector<8xf32>
    %14 = vector.shape_cast %13 : vector<8xf32> to vector<8x1xf32>
    %15 = math.log %14 : vector<8x1xf32>
    %16 = arith.addf %9, %15 : vector<8x1xf32>
    %17 = tpu.iota {dimensions = array<i32: 1>} : vector<8x16xi32>
    %18 = vector.broadcast %1 : vector<8x1xi32> to vector<8x16xi32>
    %19 = arith.cmpi eq, %17, %18 : vector<8x16xi32>
    %20 = arith.extui %19 : vector<8x16xi1> to vector<8x16xi32>
    %21 = arith.sitofp %20 : vector<8x16xi32> to vector<8x16xf32>
    %cst_5 = arith.constant 0.899999976 : f32
    %22 = vector.broadcast %cst_5 : f32 to vector<8x16xf32>
    %23 = arith.mulf %22, %21 : vector<8x16xf32>
    %cst_6 = arith.constant 6.250000e-03 : f32
    %24 = vector.broadcast %cst_6 : f32 to vector<8x16xf32>
    %25 = arith.addf %24, %23 : vector<8x16xf32>
    %26 = arith.mulf %25, %0 : vector<8x16xf32>
    %cst_7 = arith.constant dense<0.000000e+00> : vector<8xf32>
    %27 = vector.multi_reduction <add>, %26, %cst_7 [1] : vector<8x16xf32> to vector<8xf32>
    %28 = vector.shape_cast %27 : vector<8xf32> to vector<8x1xf32>
    %29 = arith.subf %16, %28 : vector<8x1xf32>
    %cst_8 = arith.constant 0.000000e+00 : f32
    %30 = vector.broadcast %cst_8 : f32 to vector<8x1xf32>
    %31 = arith.select %7, %29, %30 : vector<8x1xi1>, vector<8x1xf32>
    %32 = vector.shape_cast %31 : vector<8x1xf32> to vector<1x8x1xf32>
    %cst_9 = arith.constant dense<0.000000e+00> : vector<1xf32>
    %33 = vector.multi_reduction <add>, %32, %cst_9 [1, 2] : vector<1x8x1xf32> to vector<1xf32>
    %34 = vector.shape_cast %33 : vector<1xf32> to vector<1x1x1xf32>
    %35 = vector.extract %34[0, 0, 0] : f32 from vector<1x1x1xf32>
    %36 = tpu.iota {dimensions = array<i32: 1>} : vector<1x8x128xi32>
    %37 = tpu.iota {dimensions = array<i32: 2>} : vector<1x8x128xi32>
    %c0_i32 = arith.constant 0 : i32
    %38 = vector.broadcast %c0_i32 : i32 to vector<1x8x128xi32>
    %39 = arith.cmpi eq, %36, %38 : vector<1x8x128xi32>
    %c0_i32_10 = arith.constant 0 : i32
    %40 = vector.broadcast %c0_i32_10 : i32 to vector<1x8x128xi32>
    %41 = arith.cmpi eq, %37, %40 : vector<1x8x128xi32>
    %42 = arith.andi %39, %41 : vector<1x8x128xi1>
    %cst_11 = arith.constant 0.000000e+00 : f32
    %43 = vector.broadcast %35 : f32 to vector<1x8x128xf32>
    %44 = vector.broadcast %cst_11 : f32 to vector<1x8x128xf32>
    %45 = arith.select %42, %43, %44 : vector<1x8x128xi1>, vector<1x8x128xf32>
    %c0_12 = arith.constant 0 : index
    %c0_13 = arith.constant 0 : index
    %c0_14 = arith.constant 0 : index
    %46 = vector.load %arg3[%c0_12, %c0_13, %c0_14] : memref<1x8x128xf32, #tpu.memory_space<vmem>>, vector<1x8x128xf32>
    tpu.vector_store %arg3[%c0_12, %c0_13, %c0_14], %45 {strides = array<i32>} : memref<1x8x128xf32, #tpu.memory_space<vmem>>, vector<1x8x128xf32>,
    return
  }
  func.func @transform_0(%arg0: i32) -> (i32, i32) {
    %c0_i32 = arith.constant 0 : i32
    %c0_i32_0 = arith.constant 0 : i32
    return %arg0, %c0_i32 : i32, i32
  }
  func.func @transform_1(%arg0: i32) -> (i32, i32) {
    %c0_i32 = arith.constant 0 : i32
    %c0_i32_0 = arith.constant 0 : i32
    return %arg0, %c0_i32 : i32, i32
  }
  func.func @transform_2(%arg0: i32) -> (i32, i32, i32) {
    %c0_i32 = arith.constant 0 : i32
    %c0_i32_0 = arith.constant 0 : i32
    %c0_i32_1 = arith.constant 0 : i32
    return %arg0, %c0_i32, %c0_i32_0 : i32, i32, i32
  }
}

</mosaic_0001>

<bundles_post_ra>
// kernel: tpu_custom_call.1
= control target key start
LH: loop header
LB: loop body
LE: loop exit
PB: predicated region body
PF: predicated region fallthrough
CT: control target
= control target key end

     0   :  { %vm20_vm0 = vcmask 130048   ;;  %s149_s0 = inlined_call_operand.vmem [shape: f32[8,16], index: 0, kind: input, shape index: {}]   ;;  %s150_s1 = inlined_call_operand.vmem [shape: s32[8,1], index: 1, kind: input, shape index: {}]   ;;  %s151_s2 = inlined_call_operand.hbm [shape: f32[1,8,128], index: 2, kind: output, shape index: {}]  }
   0x1   :  { %v12_v0 = vld [vmem:[%s149_s0] sm:$0xff] }
   0x2   :  { %7 = vsyncpa [#allocation3], 0  ;;  %v21_v1 = vsel %vm20_vm0, %v12_v0, -inf  ;;  %v119_v2 = vmov 0   ;;  %v13_v3 = vld [vmem:[%s150_s1] sm:$0xff]  ;;  %v15_v9 = vlaneseq  ;;  %v120_v12 = vmov 0.0  }
   0x3   :  { %88 = vset.pattern.permute.xlu0 %v119_v2  ;;  %vm49_vm2 = vcmask 7168   ;;  %s121_s0 = smov [#allocation2]   ;;  %s73_s15 = sshll.u32 %s151_s2, 4  ;;  %s74_s15 = int_to_ptr.hbm [resolvable:$true] %s73_s15 }
   0x4   :  { %22 = vmax.xlane.f32.xlu0 %v21_v1  ;;  %v34_v10 = vand.u32 127, %v15_v9  ;;  %v16_v32 = vshrl.u32 %v15_v9, 7  ;;  %s71_s1 = sshll.u32 %s121_s0, 4  ;;  %s72_s1 = int_to_ptr.vmem [resolvable:$true] %s71_s1 }
   0x6   :  { %vm60_vm3 = vcmp.eq.s32.totalorder %v16_v32, 0  ;;  %vm61_vm4 = vcmp.eq.s32.totalorder %v34_v10, 0 }
   0x7   :  { %vm62_vm5 = vmand %vm60_vm3, %vm61_vm4 }
  0x18   :  { %36 = vperm.xlu0 %88, %v13_v3  }
  0x77   :  { %v23_v4 = vpop.xlane.xlu0 %22 }
  0x78   :  { %v24_v5 = vsub.f32 %v12_v0, %v23_v4 }
  0x7a   :  { %v25_v6 = vmul.f32 1.442695, %v24_v5 }
  0x7c   :  { %89 = vpow2.f32 %v25_v6 }
  0x82   :  { %v90_v7 = vpop.eup %89 }
  0x83   :  { %v27_v8 = vsel %vm20_vm0, %v90_v7, 0.0 }
  0x84   :  { %28 = vadd.xlane.f32.xlu1 %v27_v8 }
  0x8a   :  { %v37_v11 = vpop.permute.xlu0 %36 }
  0x8b   :  { %vm38_vm1 = vcmp.eq.s32.totalorder %v34_v10, %v37_v11 }
  0x8c   :  { %v82_v13 = vsel %vm38_vm1, 1.0, %v120_v12 }
  0x8d   :  { %v41_v14 = vmul.f32 0.9, %v82_v13 }
  0x8f   :  { %v42_v15 = vadd.f32 0.00625, %v41_v14 }
  0x91   :  { %v43_v16 = vmul.f32 %v42_v15, %v12_v0 }
  0x93   :  { %v44_v17 = vsel %vm20_vm0, %v43_v16, 0.0 }
  0x94   :  { %45 = vadd.xlane.f32.xlu1 %v44_v17 }
  0xf7   :  { %v29_v18 = vpop.xlane.xlu1 %28 }
  0xf8   :  { %91 = vlog2.f32 %v29_v18 }
  0xfe   :  { %v92_v19 = vpop.eup %91 }
  0xff   :  { %v31_v20 = vmul.f32 0.6931472, %v92_v19 }
 0x101   :  { %v32_v21 = vadd.f32 %v31_v20, %v23_v4 }
 0x107   :  { %v46_v22 = vpop.xlane.xlu1 %45 }
 0x108   :  { %v47_v23 = vsub.f32 %v32_v21, %v46_v22 }
 0x10a   :  { %v50_v24 = vsel %vm49_vm2, %v47_v23, 0.0 }
 0x10b   :  { %51 = vadd.xlane.f32.xlu2 %v50_v24 }
 0x17e   :  { %v52_v25 = vpop.xlane.xlu2 %51 }
 0x17f   :  { %v53_v26 = vrot.slane %v52_v25, 4 }
 0x181   :  { %v54_v27 = vadd.f32 %v53_v26, %v52_v25 }
 0x183   :  { %v55_v28 = vrot.slane %v54_v27, 2 }
 0x185   :  { %v56_v29 = vadd.f32 %v55_v28, %v54_v27 }
 0x187   :  { %v57_v30 = vrot.slane %v56_v29, 1 }
 0x189   :  { %v58_v31 = vadd.f32 %v57_v30, %v56_v29 }
 0x18b   :  { %83 = vpush %v58_v31 }
 0x1bc   :  { %s84_s16 = spop %83 }
 0x1bd   :  { %v63_v33 = vstv %s84_s16 }
 0x1be   :  { %v64_v34 = vsel %vm62_vm5, %v63_v33, 0.0 }
 0x1bf   :  { %65 = vst [vmem:[#allocation2] sm:$0xff] %v64_v34 }
 0x1c0   :  { %76 = dma.vmem_to_hbm [thread:$0]  %s72_s1, 128, %s74_s15, [#allocation3]  }
 0x1c1   :  { %117 = dma.done.wait [#allocation3], 128  }
 0x1c2   :  { %118 = vsyncadd [#allocation3], 4294967168 }
 0x1c3   :  { %81 = vsyncpa [#allocation3], 1 }

</bundles_post_ra>
